<compile_context>
chip_gen: v7x
topology: tpu7x:2x2x1
jax: 0.10.0
libtpu: 0.0.40
codegen_flags: <defaults>
</compile_context>

<pallas_src>
import functools

import jax
import jax.numpy as jnp
from jax.experimental import pallas as pl
from jax.experimental.pallas import tpu as pltpu


# --------------------------------------------------------------------------
# VMEM budgeting / tiling heuristics
# --------------------------------------------------------------------------
def _vmem_budget_bytes():
    """~75% of per-core VMEM (64 MiB on v7x, 128 MiB on v5e/v6e)."""
    cap = 64 << 20  # conservative default = v7x per-TensorCore VMEM
    try:
        cap = int(pltpu.get_tpu_info().vmem_capacity_bytes)
    except Exception:
        pass
    return (cap * 3) // 4


def _pick_nb(n, per_sample_bytes, max_block_bytes,
             target_bytes=2 << 20, nb_cap=16):
    """Largest divisor of n (<= nb_cap) whose slab fits max_block_bytes,
    stopping once the per-step DMA reaches ~target_bytes."""
    nb = 1
    for d in range(1, n + 1):
        if n % d:
            continue
        if d > nb_cap or d * per_sample_bytes > max_block_bytes:
            break
        nb = d
        if d * per_sample_bytes >= target_bytes:
            break
    return nb


def _pick_hw_tile(hw, max_thw):
    """Largest divisor of hw that fits max_thw, preferring multiples of 128
    (unmasked lane-dense loads/stores)."""
    divs = set()
    i = 1
    while i * i <= hw:
        if hw % i == 0:
            divs.add(i)
            divs.add(hw // i)
        i += 1
    divs = sorted(divs)
    fit = [d for d in divs if d <= max_thw]
    if not fit:
        return divs[0]
    lane_dense = [d for d in fit if d % 128 == 0]
    if lane_dense:
        return lane_dense[-1]
    # No 128-multiple divisor fits: largest fitting divisor (trailing lane
    # tile is masked -- still correct, just slower stores).
    return fit[-1]


# --------------------------------------------------------------------------
# Kernels
# --------------------------------------------------------------------------
def _se_fused_kernel(x_ref, w1_ref, b1_ref, w2_ref, b2_ref, o_ref, *, nb):
    # x_ref: (nb, C, HW)   w1: (Ch, C)  b1: (Ch, 1)  w2: (C, Ch)  b2: (C, 1)
    w1 = w1_ref[...]
    b1 = b1_ref[...]
    w2 = w2_ref[...]
    b2 = b2_ref[...]
    for n in range(nb):                     # static unroll, nb is small (<=16)
        x = x_ref[n]                        # (C, HW), native dtype
        # Squeeze: global average pool over spatial (lane reduction, f32 acc).
        pooled = jnp.mean(x.astype(jnp.float32), axis=-1, keepdims=True)  # (C,1)
        # Excite: two tiny FCs in column form (MXU), ReLU (VPU), sigmoid (EUP).
        h = jnp.maximum(
            jnp.dot(w1, pooled, preferred_element_type=jnp.float32) + b1, 0.0)
        s = jax.nn.sigmoid(
            jnp.dot(w2, h, preferred_element_type=jnp.float32) + b2)       # (C,1)
        # Scale: per-channel rescale in the INPUT dtype (bf16 stays bf16).
        o_ref[n] = (x * s.astype(x.dtype)).astype(o_ref.dtype)


def _pool_excite_kernel(x_ref, w1_ref, b1_ref, w2_ref, b2_ref, s_ref, acc_ref,
                        *, inv_hw):
    # Fallback pass 1: accumulate per-channel sums over HW tiles; at the last
    # tile compute the sigmoid scale for this sample.
    t = pl.program_id(1)

    @pl.when(t == 0)
    def _():
        acc_ref[...] = jnp.zeros_like(acc_ref)

    xf = x_ref[0].astype(jnp.float32)                       # (C, thw)
    acc_ref[...] += jnp.sum(xf, axis=-1, keepdims=True)     # (C, 1)

    @pl.when(t == pl.num_programs(1) - 1)
    def _():
        pooled = acc_ref[...] * inv_hw                      # (C, 1)
        h = jnp.maximum(
            jnp.dot(w1_ref[...], pooled,
                    preferred_element_type=jnp.float32) + b1_ref[...], 0.0)
        s_ref[0] = jax.nn.sigmoid(
            jnp.dot(w2_ref[...], h,
                    preferred_element_type=jnp.float32) + b2_ref[...])


def _rescale_kernel(x_ref, s_ref, o_ref):
    # Fallback pass 2: stream the per-channel rescale.
    x = x_ref[0]                                            # (C, thw)
    o_ref[0] = (x * s_ref[0].astype(x.dtype)).astype(o_ref.dtype)


# --------------------------------------------------------------------------
# Wrapper
# --------------------------------------------------------------------------
def se_block(x, w1, b1, w2, b2, *, force_two_pass=False, hw_tile=None):
    """Pallas SE-block forward.

    x:  (N, C, H, W)  NCHW, same as PyTorch.
    w1: (C//r, C)     fc1.weight (PyTorch (out, in) layout);  b1: (C//r,)
    w2: (C, C//r)     fc2.weight;                             b2: (C,)
    """
    N, C, H, W = x.shape
    Ch = w1.shape[0]
    HW = H * W
    itemsize = x.dtype.itemsize

    # Lane-dense view of the spatial dims (free: NCHW spatial is contiguous).
    x_flat = x.reshape(N, C, HW)
    b1_col = b1.reshape(Ch, 1)
    b2_col = b2.reshape(C, 1)

    budget = _vmem_budget_bytes()
    w_itemsize = jnp.dtype(w1.dtype).itemsize
    n_w_elems = int(w1.size + b1.size + w2.size + b2.size)
    weight_bytes = 2 * n_w_elems * w_itemsize          # default double-buffering
    headroom = 4 << 20
    avail = max(0, budget - weight_bytes - headroom)
    per_sample = C * HW * itemsize

    full_cost = pl.CostEstimate(
        flops=int(4 * N * C * Ch + N * C * HW),        # two tiny FCs + rescale
        transcendentals=int(N * C),                    # sigmoid
        bytes_accessed=int(2 * N * C * HW * itemsize + n_w_elems * w_itemsize),
    )

    use_fused = (not force_two_pass) and (4 * per_sample <= avail)

    if use_fused:
        # ---- single fused pass: x read once, written once ------------------
        nb = _pick_nb(N, per_sample, max(per_sample, avail // 4))
        need = 4 * nb * per_sample + weight_bytes + headroom
        vmem_limit = int(min(budget, max(need, 16 << 20)))
        out_flat = pl.pallas_call(
            functools.partial(_se_fused_kernel, nb=nb),
            out_shape=jax.ShapeDtypeStruct((N, C, HW), x.dtype),
            grid=(N // nb,),
            in_specs=[
                pl.BlockSpec((nb, C, HW), lambda n: (n, 0, 0)),
                pl.BlockSpec((Ch, C), lambda n: (0, 0)),
                pl.BlockSpec((Ch, 1), lambda n: (0, 0)),
                pl.BlockSpec((C, Ch), lambda n: (0, 0)),
                pl.BlockSpec((C, 1), lambda n: (0, 0)),
            ],
            out_specs=pl.BlockSpec((nb, C, HW), lambda n: (n, 0, 0)),
            compiler_params=pltpu.CompilerParams(
                dimension_semantics=("parallel",),
                vmem_limit_bytes=vmem_limit),
            cost_estimate=full_cost,
        )(x_flat, w1, b1_col, w2, b2_col)
        return out_flat.reshape(N, C, H, W)

    # ---- tiled two-pass fallback (sample slab does not fit VMEM) -----------
    if hw_tile is not None and HW % int(hw_tile) == 0:
        thw = int(hw_tile)
    else:
        max_thw = max(1, avail // max(1, 4 * C * itemsize))
        thw = _pick_hw_tile(HW, max_thw)
    n_hw_tiles = HW // thw
    need = 4 * C * thw * itemsize + weight_bytes + headroom
    vmem_limit = int(min(budget, max(need, 16 << 20)))

    # Pass 1: per-channel sums over HW tiles -> sigmoid scale (N, C, 1).
    s_cols = pl.pallas_call(
        functools.partial(_pool_excite_kernel, inv_hw=1.0 / HW),
        out_shape=jax.ShapeDtypeStruct((N, C, 1), jnp.float32),
        grid=(N, n_hw_tiles),
        in_specs=[
            pl.BlockSpec((1, C, thw), lambda n, t: (n, 0, t)),
            pl.BlockSpec((Ch, C), lambda n, t: (0, 0)),
            pl.BlockSpec((Ch, 1), lambda n, t: (0, 0)),
            pl.BlockSpec((C, Ch), lambda n, t: (0, 0)),
            pl.BlockSpec((C, 1), lambda n, t: (0, 0)),
        ],
        out_specs=pl.BlockSpec((1, C, 1), lambda n, t: (n, 0, 0)),
        scratch_shapes=[pltpu.VMEM((C, 1), jnp.float32)],
        compiler_params=pltpu.CompilerParams(
            dimension_semantics=("parallel", "arbitrary"),
            vmem_limit_bytes=vmem_limit),
        cost_estimate=pl.CostEstimate(
            flops=int(4 * N * C * Ch + N * C * HW),
            transcendentals=int(N * C),
            bytes_accessed=int(N * C * HW * itemsize + n_w_elems * w_itemsize),
        ),
    )(x_flat, w1, b1_col, w2, b2_col)

    # Pass 2: stream the rescale (both grid axes independent).
    out_flat = pl.pallas_call(
        _rescale_kernel,
        out_shape=jax.ShapeDtypeStruct((N, C, HW), x.dtype),
        grid=(N, n_hw_tiles),
        in_specs=[
            pl.BlockSpec((1, C, thw), lambda n, t: (n, 0, t)),
            pl.BlockSpec((1, C, 1), lambda n, t: (n, 0, 0)),
        ],
        out_specs=pl.BlockSpec((1, C, thw), lambda n, t: (n, 0, t)),
        compiler_params=pltpu.CompilerParams(
            dimension_semantics=("parallel", "parallel"),
            vmem_limit_bytes=vmem_limit),
        cost_estimate=pl.CostEstimate(
            flops=int(N * C * HW),
            transcendentals=0,
            bytes_accessed=int(2 * N * C * HW * itemsize + N * C * 4),
        ),
    )(x_flat, s_cols)
    return out_flat.reshape(N, C, H, W)


def se_block_ref(x, w1, b1, w2, b2):
    """Pure-JAX reference replicating the PyTorch forward exactly."""
    xf = x.astype(jnp.float32)
    pooled = jnp.mean(xf, axis=(2, 3))                       # (N, C)
    h = jax.nn.relu(pooled @ w1.T + b1)                      # (N, Ch)
    s = jax.nn.sigmoid(h @ w2.T + b2)                        # (N, C)
    return (xf * s[:, :, None, None]).astype(x.dtype)


if __name__ == "__main__":
    # SeBlock(inputs=64, reduces=16): C=64 channels, hidden = 64 // 16 = 4.
    N, C, H, W = 2, 64, 16, 16
    reduces = 16
    Ch = C // reduces

    key = jax.random.PRNGKey(0)
    kx, k1, k2, k3, k4 = jax.random.split(key, 5)
    x = jax.random.normal(kx, (N, C, H, W), dtype=jnp.float32)
    w1 = jax.random.normal(k1, (Ch, C), dtype=jnp.float32) * 0.1
    b1 = jax.random.normal(k2, (Ch,), dtype=jnp.float32) * 0.1
    w2 = jax.random.normal(k3, (C, Ch), dtype=jnp.float32) * 0.1
    b2 = jax.random.normal(k4, (C,), dtype=jnp.float32) * 0.1

    ref = se_block_ref(x, w1, b1, w2, b2)

    # Main fused path.
    out = jax.block_until_ready(se_block(x, w1, b1, w2, b2))
    assert out.shape == ref.shape
    assert jnp.allclose(out, ref, atol=2e-5, rtol=2e-5), \
        float(jnp.max(jnp.abs(out - ref)))

    # Also exercise the tiled two-pass fallback (the path used when a full
    # (C, H*W) sample slab would not fit the VMEM budget, e.g. on v7x).
    out2 = jax.block_until_ready(
        se_block(x, w1, b1, w2, b2, force_two_pass=True, hw_tile=128))
    assert jnp.allclose(out2, ref, atol=2e-5, rtol=2e-5), \
        float(jnp.max(jnp.abs(out2 - ref)))

    print("KERNEL_OK")
</pallas_src>

<mosaic_0001>
module attributes {stable_mosaic.version = 11 : i64} {
  func.func @_se_fused_kernel(%arg0: i32, %arg1: memref<2x64x256xf32, #tpu.memory_space<vmem>>, %arg2: memref<4x64xf32, #tpu.memory_space<vmem>>, %arg3: memref<4x1xf32, #tpu.memory_space<vmem>>, %arg4: memref<64x4xf32, #tpu.memory_space<vmem>>, %arg5: memref<64x1xf32, #tpu.memory_space<vmem>>, %arg6: memref<2x64x256xf32, #tpu.memory_space<vmem>>) attributes {dimension_semantics = [#tpu.dimension_semantics<parallel>], iteration_bounds = array<i64: 1>, scalar_prefetch = 0 : i64, scratch_operands = 0 : i64, tpu.core_type = #tpu.core_type<tc>, window_params = [{transform_indices = @transform_0, window_bounds = array<i64: 2, 64, 256>}, {pipeline_mode = #tpu.pipeline_mode<synchronous>, transform_indices = @transform_1, window_bounds = array<i64: 4, 64>}, {pipeline_mode = #tpu.pipeline_mode<synchronous>, transform_indices = @transform_2, window_bounds = array<i64: 4, 1>}, {pipeline_mode = #tpu.pipeline_mode<synchronous>, transform_indices = @transform_3, window_bounds = array<i64: 64, 4>}, {pipeline_mode = #tpu.pipeline_mode<synchronous>, transform_indices = @transform_4, window_bounds = array<i64: 64, 1>}, {transform_indices = @transform_5, window_bounds = array<i64: 2, 64, 256>}]} {
    %c0 = arith.constant 0 : index
    %c0_0 = arith.constant 0 : index
    %0 = vector.load %arg2[%c0, %c0_0] : memref<4x64xf32, #tpu.memory_space<vmem>>, vector<4x64xf32>
    %c0_1 = arith.constant 0 : index
    %c0_2 = arith.constant 0 : index
    %1 = vector.load %arg3[%c0_1, %c0_2] : memref<4x1xf32, #tpu.memory_space<vmem>>, vector<4x1xf32>
    %c0_3 = arith.constant 0 : index
    %c0_4 = arith.constant 0 : index
    %2 = vector.load %arg4[%c0_3, %c0_4] : memref<64x4xf32, #tpu.memory_space<vmem>>, vector<64x4xf32>
    %c0_5 = arith.constant 0 : index
    %c0_6 = arith.constant 0 : index
    %3 = vector.load %arg5[%c0_5, %c0_6] : memref<64x1xf32, #tpu.memory_space<vmem>>, vector<64x1xf32>
    %c0_7 = arith.constant 0 : index
    %c0_8 = arith.constant 0 : index
    %c0_9 = arith.constant 0 : index
    %4 = vector.load %arg1[%c0_7, %c0_8, %c0_9] : memref<2x64x256xf32, #tpu.memory_space<vmem>>, vector<1x64x256xf32>
    %5 = vector.shape_cast %4 : vector<1x64x256xf32> to vector<64x256xf32>
    %cst = arith.constant dense<0.000000e+00> : vector<64xf32>
    %6 = vector.multi_reduction <add>, %5, %cst [1] : vector<64x256xf32> to vector<64xf32>
    %7 = vector.shape_cast %6 : vector<64xf32> to vector<64x1xf32>
    %cst_10 = arith.constant 2.560000e+02 : f32
    %8 = vector.broadcast %cst_10 : f32 to vector<64x1xf32>
    %9 = arith.divf %7, %8 : vector<64x1xf32>
    %cst_11 = arith.constant dense<0.000000e+00> : vector<4x1xf32>
    %10 = tpu.matmul %0, %9, %cst_11 {dimension_numbers = #tpu.dot_dimension_numbers<[1], [0], [0], [1], [0, 0, 1, 1], [], []>} : vector<4x64xf32>, vector<64x1xf32>, vector<4x1xf32> -> vector<4x1xf32>
    %11 = arith.addf %10, %1 : vector<4x1xf32>
    %cst_12 = arith.constant 0.000000e+00 : f32
    %12 = vector.broadcast %cst_12 : f32 to vector<4x1xf32>
    %13 = arith.maximumf %11, %12 : vector<4x1xf32>
    %cst_13 = arith.constant dense<0.000000e+00> : vector<64x1xf32>
    %14 = tpu.matmul %2, %13, %cst_13 {dimension_numbers = #tpu.dot_dimension_numbers<[1], [0], [0], [1], [0, 0, 1, 1], [], []>} : vector<64x4xf32>, vector<4x1xf32>, vector<64x1xf32> -> vector<64x1xf32>
    %15 = arith.addf %14, %3 : vector<64x1xf32>
    %16 = arith.negf %15 : vector<64x1xf32>
    %17 = math.exp %16 : vector<64x1xf32>
    %cst_14 = arith.constant 1.000000e+00 : f32
    %18 = vector.broadcast %cst_14 : f32 to vector<64x1xf32>
    %19 = arith.addf %18, %17 : vector<64x1xf32>
    %20 = arith.divf %18, %19 : vector<64x1xf32>
    %21 = vector.broadcast %20 : vector<64x1xf32> to vector<64x256xf32>
    %22 = arith.mulf %5, %21 : vector<64x256xf32>
    %c0_15 = arith.constant 0 : index
    %c0_16 = arith.constant 0 : index
    %c0_17 = arith.constant 0 : index
    %23 = vector.load %arg6[%c0_15, %c0_16, %c0_17] : memref<2x64x256xf32, #tpu.memory_space<vmem>>, vector<1x64x256xf32>
    %24 = vector.shape_cast %23 : vector<1x64x256xf32> to vector<64x256xf32>
    %25 = vector.shape_cast %22 : vector<64x256xf32> to vector<1x64x256xf32>
    tpu.vector_store %arg6[%c0_15, %c0_16, %c0_17], %25 {strides = array<i32>} : memref<2x64x256xf32, #tpu.memory_space<vmem>>, vector<1x64x256xf32>,
    %c1 = arith.constant 1 : index
    %c0_18 = arith.constant 0 : index
    %c0_19 = arith.constant 0 : index
    %26 = vector.load %arg1[%c1, %c0_18, %c0_19] : memref<2x64x256xf32, #tpu.memory_space<vmem>>, vector<1x64x256xf32>
    %27 = vector.shape_cast %26 : vector<1x64x256xf32> to vector<64x256xf32>
    %cst_20 = arith.constant dense<0.000000e+00> : vector<64xf32>
    %28 = vector.multi_reduction <add>, %27, %cst_20 [1] : vector<64x256xf32> to vector<64xf32>
    %29 = vector.shape_cast %28 : vector<64xf32> to vector<64x1xf32>
    %cst_21 = arith.constant 2.560000e+02 : f32
    %30 = vector.broadcast %cst_21 : f32 to vector<64x1xf32>
    %31 = arith.divf %29, %30 : vector<64x1xf32>
    %cst_22 = arith.constant dense<0.000000e+00> : vector<4x1xf32>
    %32 = tpu.matmul %0, %31, %cst_22 {dimension_numbers = #tpu.dot_dimension_numbers<[1], [0], [0], [1], [0, 0, 1, 1], [], []>} : vector<4x64xf32>, vector<64x1xf32>, vector<4x1xf32> -> vector<4x1xf32>
    %33 = arith.addf %32, %1 : vector<4x1xf32>
    %cst_23 = arith.constant 0.000000e+00 : f32
    %34 = vector.broadcast %cst_23 : f32 to vector<4x1xf32>
    %35 = arith.maximumf %33, %34 : vector<4x1xf32>
    %cst_24 = arith.constant dense<0.000000e+00> : vector<64x1xf32>
    %36 = tpu.matmul %2, %35, %cst_24 {dimension_numbers = #tpu.dot_dimension_numbers<[1], [0], [0], [1], [0, 0, 1, 1], [], []>} : vector<64x4xf32>, vector<4x1xf32>, vector<64x1xf32> -> vector<64x1xf32>
    %37 = arith.addf %36, %3 : vector<64x1xf32>
    %38 = arith.negf %37 : vector<64x1xf32>
    %39 = math.exp %38 : vector<64x1xf32>
    %cst_25 = arith.constant 1.000000e+00 : f32
    %40 = vector.broadcast %cst_25 : f32 to vector<64x1xf32>
    %41 = arith.addf %40, %39 : vector<64x1xf32>
    %42 = arith.divf %40, %41 : vector<64x1xf32>
    %43 = vector.broadcast %42 : vector<64x1xf32> to vector<64x256xf32>
    %44 = arith.mulf %27, %43 : vector<64x256xf32>
    %c1_26 = arith.constant 1 : index
    %c0_27 = arith.constant 0 : index
    %c0_28 = arith.constant 0 : index
    %45 = vector.load %arg6[%c1_26, %c0_27, %c0_28] : memref<2x64x256xf32, #tpu.memory_space<vmem>>, vector<1x64x256xf32>
    %46 = vector.shape_cast %45 : vector<1x64x256xf32> to vector<64x256xf32>
    %47 = vector.shape_cast %44 : vector<64x256xf32> to vector<1x64x256xf32>
    tpu.vector_store %arg6[%c1_26, %c0_27, %c0_28], %47 {strides = array<i32>} : memref<2x64x256xf32, #tpu.memory_space<vmem>>, vector<1x64x256xf32>,
    return
  }
  func.func @transform_0(%arg0: i32) -> (i32, i32, i32) {
    %c0_i32 = arith.constant 0 : i32
    %c0_i32_0 = arith.constant 0 : i32
    %c0_i32_1 = arith.constant 0 : i32
    return %arg0, %c0_i32, %c0_i32_0 : i32, i32, i32
  }
  func.func @transform_1(%arg0: i32) -> (i32, i32) {
    %c0_i32 = arith.constant 0 : i32
    %c0_i32_0 = arith.constant 0 : i32
    %c0_i32_1 = arith.constant 0 : i32
    return %c0_i32, %c0_i32_0 : i32, i32
  }
  func.func @transform_2(%arg0: i32) -> (i32, i32) {
    %c0_i32 = arith.constant 0 : i32
    %c0_i32_0 = arith.constant 0 : i32
    %c0_i32_1 = arith.constant 0 : i32
    return %c0_i32, %c0_i32_0 : i32, i32
  }
  func.func @transform_3(%arg0: i32) -> (i32, i32) {
    %c0_i32 = arith.constant 0 : i32
    %c0_i32_0 = arith.constant 0 : i32
    %c0_i32_1 = arith.constant 0 : i32
    return %c0_i32, %c0_i32_0 : i32, i32
  }
  func.func @transform_4(%arg0: i32) -> (i32, i32) {
    %c0_i32 = arith.constant 0 : i32
    %c0_i32_0 = arith.constant 0 : i32
    %c0_i32_1 = arith.constant 0 : i32
    return %c0_i32, %c0_i32_0 : i32, i32
  }
  func.func @transform_5(%arg0: i32) -> (i32, i32, i32) {
    %c0_i32 = arith.constant 0 : i32
    %c0_i32_0 = arith.constant 0 : i32
    %c0_i32_1 = arith.constant 0 : i32
    return %arg0, %c0_i32, %c0_i32_0 : i32, i32, i32
  }
}

</mosaic_0001>

<bundles_post_ra>
// kernel: tpu_custom_call.1
= control target key start
LH: loop header
LB: loop body
LE: loop exit
PB: predicated region body
PF: predicated region fallthrough
CT: control target
= control target key end

     0   :  { %10 = vsyncpa [#allocation3], 0  ;;  %s1429_s0 = inlined_call_operand.hbm [shape: f32[2,64,256], index: 0, kind: input, shape index: {}]   ;;  %s1430_s1 = inlined_call_operand.vmem [shape: f32[4,64], index: 1, kind: input, shape index: {}]   ;;  %s1431_s2 = inlined_call_operand.vmem [shape: f32[4,1], index: 2, kind: input, shape index: {}]   ;;  %s1432_s3 = inlined_call_operand.vmem [shape: f32[64,4], index: 3, kind: input, shape index: {}]   ;;  %s1433_s4 = inlined_call_operand.vmem [shape: f32[64,1], index: 4, kind: input, shape index: {}]   ;;  %s1434_s5 = inlined_call_operand.hbm [shape: f32[2,64,256], index: 5, kind: output, shape index: {}]  }
   0x1   :  { %11 = vsyncpa [#allocation4], 0  ;;  %s1083_s18 = smov [#allocation2]   ;;  %s1035_s22 = scalar_lea.hbm %s1429_s0, 4096 }
   0x2   :  { %s17_s19 = sshll.u32 %s1083_s18, 4  ;;  %p1036_p0 = scmp.ne.s32.totalorder %s1429_s0, %s1035_s22  ;;  %s18_s19 = int_to_ptr.vmem [resolvable:$true] %s17_s19 }
   0x3   :  { %p1039_p1 = scmp.lt.u32.totalorder %s1035_s22, %s1429_s0 }
   0x5   :  { %p1041_p2 = pnand %p1039_p1, %p1036_p0 }
   0x7   :  { %1044 = shalt.err (!%p1041_p2)
}
   0x8   :  { %s1045_s27 = scalar_lea.vmem %s18_s19, 4096  ;;  %p1050_p4 = scmp.lt.s32.totalorder %s18_s19, %s18_s19 }
   0x9   :  { %p1046_p3 = scmp.ne.s32.totalorder %s18_s19, %s1045_s27  ;;  %p1051_p5 = scmp.lt.s32.totalorder %s1045_s27, %s1045_s27 }
   0xb   :  { %p1052_p6 = por %p1051_p5, %p1050_p4 }
   0xd   :  { %p1053_p7 = pnand %p1052_p6, %p1046_p3 }
   0xf   :  { %1056 = shalt.err (!%p1053_p7)
}
  0x10   :  { %s1084_s28 = smov 256   ;;  %s1085_s29 = smov 16  }
  0x11   :  { %23 = dma.hbm_to_vmem [thread:$0]  %s1429_s0, 4096, %s18_s19, [#allocation3], %s1084_s28, %s1084_s28, %s1085_s29  }
  0x12   :  { %1079 = dma.done.wait [#allocation3], 4096  }
  0x13   :  { %1080 = vsyncadd [#allocation3], 4294963200  ;;  %v1136_v0 = vld [vmem:[#allocation2 + $0x20] sm:$0xff]  ;;  %v1138_v1 = vld [vmem:[#allocation2 + $0x28] sm:$0xff]  ;;  %v1086_v24 = vmov 0.0|0.0   ;;  %vm1087_vm0 = vmmov 0  }
  0x14   :  { %v1140_v2 = vld [vmem:[#allocation2] sm:$0xff]  ;;  %v75_v3 = vadd.f32 %v1138_v1, %v1136_v0  ;;  %v1144_v4 = vld [vmem:[#allocation2 + $0x8] sm:$0xff]  ;;  %v1146_v5 = vld [vmem:[#allocation2 + $0x30] sm:$0xff]  ;;  %935 = vmatprep.subr.bf16.mxu0 %v1086_v24  ;;  %v1088_v25 = vmov 0.0   ;;  %vm102_vm1 = vcmask 523264   ;;  %vm177_vm2 = vcmask 31744  }
  0x15   :  { %v1148_v6 = vld [vmem:[#allocation2 + $0x38] sm:$0xff]  ;;  %v69_v7 = vadd.f32 %v1144_v4, %v1140_v2  ;;  %v1152_v8 = vld [vmem:[#allocation2 + $0x10] sm:$0xff]  ;;  %v1164_v14 = vld [vmem:[#allocation2 + $0x40] sm:$0xff]  ;;  %885 = vmatprep.mubr.msk.f32.mxu0 %vm1087_vm0, %v1088_v25  ;;  %vm202_vm3 = vcmask 1043456  }
  0x16   :  { %v1154_v9 = vld [vmem:[#allocation2 + $0x18] sm:$0xff]  ;;  %76 = vadd.xlane.f32.xlu1 %v75_v3  ;;  %v78_v10 = vadd.f32 %v1148_v6, %v1146_v5  ;;  %v1160_v12 = vld [vmem:[#allocation2 + $0x50] sm:$0xff]  ;;  %v1166_v15 = vld [vmem:[#allocation2 + $0x48] sm:$0xff] }
  0x17   :  { %70 = vadd.xlane.f32.xlu0 %v69_v7  ;;  %v72_v11 = vadd.f32 %v1154_v9, %v1152_v8  ;;  %v1162_v13 = vld [vmem:[#allocation2 + $0x58] sm:$0xff]  ;;  %v81_v17 = vadd.f32 %v1166_v15, %v1164_v14  ;;  %v1172_v18 = vld [vmem:[#allocation2 + $0x70] sm:$0xff]  ;;  %v1176_v20 = vld [vmem:[#allocation2 + $0x60] sm:$0xff] }
  0x18   :  { %v84_v16 = vadd.f32 %v1162_v13, %v1160_v12  ;;  %v1174_v19 = vld [vmem:[#allocation2 + $0x78] sm:$0xff]  ;;  %v1178_v21 = vld [vmem:[#allocation2 + $0x68] sm:$0xff]  ;;  %v1187_v26 = vld [vmem:[#allocation2 + $0x90] sm:$0xff] }
  0x19   :  { %v90_v22 = vadd.f32 %v1174_v19, %v1172_v18  ;;  %v87_v23 = vadd.f32 %v1178_v21, %v1176_v20  ;;  %v1189_v27 = vld [vmem:[#allocation2 + $0x98] sm:$0xff]  ;;  %v1191_v28 = vld [vmem:[#allocation2 + $0x80] sm:$0xff]  ;;  %v1195_v30 = vld [vmem:[#allocation2 + $0x88] sm:$0xff] }
  0x1a   :  { %79 = vadd.xlane.f32.xlu1 %v78_v10  ;;  %v451_v29 = vadd.f32 %v1189_v27, %v1187_v26  ;;  %v1197_v31 = vld [vmem:[#allocation2 + $0xb0] sm:$0xff]  ;;  %v1199_v32 = vld [vmem:[#allocation2 + $0xb8] sm:$0xff]  ;;  %v448_v33 = vadd.f32 %v1195_v30, %v1191_v28  ;;  %v1203_v34 = vld [vmem:[#allocation2 + $0xa0] sm:$0xff] }
  0x1b   :  { %73 = vadd.xlane.f32.xlu0 %v72_v11  ;;  %v1205_v35 = vld [vmem:[#allocation2 + $0xa8] sm:$0xff]  ;;  %v457_v36 = vadd.f32 %v1199_v32, %v1197_v31  ;;  %v1211_v38 = vld [vmem:[#allocation2 + $0xd0] sm:$0xff]  ;;  %v1213_v39 = vld [vmem:[#allocation2 + $0xd8] sm:$0xff] }
  0x1c   :  { %v454_v37 = vadd.f32 %v1205_v35, %v1203_v34  ;;  %v1215_v40 = vld [vmem:[#allocation2 + $0xc0] sm:$0xff]  ;;  %v1217_v41 = vld [vmem:[#allocation2 + $0xc8] sm:$0xff]  ;;  %v463_v42 = vadd.f32 %v1213_v39, %v1211_v38  ;;  %v1223_v44 = vld [vmem:[#allocation2 + $0xf0] sm:$0xff] }
  0x1d   :  { %v460_v43 = vadd.f32 %v1217_v41, %v1215_v40  ;;  %v1225_v45 = vld [vmem:[#allocation2 + $0xf8] sm:$0xff]  ;;  %v1227_v46 = vld [vmem:[#allocation2 + $0xe0] sm:$0xff]  ;;  %v1229_v47 = vld [vmem:[#allocation2 + $0xe8] sm:$0xff] }
  0x1e   :  { %85 = vadd.xlane.f32.xlu1 %v84_v16  ;;  %v469_v48 = vadd.f32 %v1225_v45, %v1223_v44  ;;  %v466_v49 = vadd.f32 %v1229_v47, %v1227_v46 }
  0x1f   :  { %82 = vadd.xlane.f32.xlu0 %v81_v17 }
  0x22   :  { %91 = vadd.xlane.f32.xlu1 %v90_v22  ;;  %v35_v22 = vld [vmem:[%s1430_s1] sm:$0xf] }
  0x23   :  { %88 = vadd.xlane.f32.xlu0 %v87_v23  ;;  %v37_v23 = vld [vmem:[%s1432_s3] sm:$0xff] }
  0x24   :  { %890 = vmatprep.mubr.msk.f32.mxu1 %vm177_vm2, %v37_v23 }
  0x26   :  { %452 = vadd.xlane.f32.xlu1 %v451_v29 }
  0x27   :  { %449 = vadd.xlane.f32.xlu0 %v448_v33 }
  0x2a   :  { %458 = vadd.xlane.f32.xlu1 %v457_v36 }
  0x2b   :  { %455 = vadd.xlane.f32.xlu0 %v454_v37 }
  0x2e   :  { %464 = vadd.xlane.f32.xlu1 %v463_v42  ;;  %v1250_v42 = vld [vmem:[%s1431_s2] sm:$0xf] }
  0x2f   :  { %461 = vadd.xlane.f32.xlu0 %v460_v43 }
  0x32   :  { %470 = vadd.xlane.f32.xlu1 %v469_v48 }
  0x33   :  { %467 = vadd.xlane.f32.xlu0 %v466_v49 }
  0xa3   :  { %v77_v50 = vpop.xlane.xlu1 %76 }
  0xa4   :  { %v71_v51 = vpop.xlane.xlu0 %70  ;;  %v96_v56 = vmul.f32 0.00390625, %v77_v50 }
  0xa5   :  { %v94_v54 = vmul.f32 0.00390625, %v71_v51 }
  0xa7   :  { %v80_v52 = vpop.xlane.xlu1 %79 }
  0xa8   :  { %v74_v53 = vpop.xlane.xlu0 %73  ;;  %v97_v57 = vmul.f32 0.00390625, %v80_v52 }
  0xa9   :  { %v95_v55 = vmul.f32 0.00390625, %v74_v53 }
  0xaa   :  { %v939_v63 = vpack.c.bf16 %v97_v57, %v96_v56 }
  0xab   :  { %v936_v58 = vpack.c.bf16 %v95_v55, %v94_v54  ;;  %v86_v59 = vpop.xlane.xlu1 %85 }
  0xac   :  { %v83_v60 = vpop.xlane.xlu0 %82  ;;  %v99_v61 = vmul.f32 0.00390625, %v86_v59  ;;  %v1262_v59 = vld [vmem:[%s1432_s3 + $0x10] sm:$0xff] }
  0xad   :  { %937 = vmatpush3.bf16.msra.mxu0 %v936_v58  ;;  %v98_v62 = vmul.f32 0.00390625, %v83_v60  ;;  %v1256_v58 = vld [vmem:[%s1432_s3 + $0x8] sm:$0xff] }
  0xae   :  { %938 = vmatprep.subr.bf16.mxu0 %v1086_v24 }
  0xaf   :  { %v92_v3 = vpop.xlane.xlu1 %91  ;;  %v942_v10 = vpack.c.bf16 %v99_v61, %v98_v62 }
  0xb0   :  { %v89_v7 = vpop.xlane.xlu0 %88  ;;  %v101_v11 = vmul.f32 0.00390625, %v92_v3  ;;  %v1279_v3 = vld [vmem:[%s1432_s3 + $0x20] sm:$0xff] }
  0xb1   :  { %940 = vmatpush3.bf16.msra.mxu0 %v939_v63  ;;  %v100_v16 = vmul.f32 0.00390625, %v89_v7  ;;  %v1273_v63 = vld [vmem:[%s1432_s3 + $0x18] sm:$0xff] }
  0xb2   :  { %941 = vmatprep.subr.bf16.mxu0 %v1086_v24 }
  0xb3   :  { %v945_v17 = vpack.c.bf16 %v101_v11, %v100_v16  ;;  %v453_v29 = vpop.xlane.xlu1 %452 }
  0xb4   :  { %v450_v33 = vpop.xlane.xlu0 %449  ;;  %v473_v48 = vmul.f32 0.00390625, %v453_v29  ;;  %v43_v29 = vld [vmem:[%s1432_s3 + $0x30] sm:$0xff] }
  0xb5   :  { %943 = vmatpush3.bf16.msra.mxu0 %v942_v10  ;;  %v472_v49 = vmul.f32 0.00390625, %v450_v33 }
  0xb6   :  { %944 = vmatprep.subr.bf16.mxu0 %v1086_v24 }
  0xb7   :  { %v459_v36 = vpop.xlane.xlu1 %458  ;;  %v948_v55 = vpack.c.bf16 %v473_v48, %v472_v49 }
  0xb8   :  { %v456_v37 = vpop.xlane.xlu0 %455  ;;  %v475_v56 = vmul.f32 0.00390625, %v459_v36  ;;  %v1300_v36 = vld [vmem:[%s1432_s3 + $0x38] sm:$0xff] }
  0xb9   :  { %946 = vmatpush3.bf16.msra.mxu0 %v945_v17  ;;  %v474_v57 = vmul.f32 0.00390625, %v456_v37  ;;  %v1089_v37 = vmov 0  }
  0xba   :  { %969 = vset.pattern.permute.xlu1 %v1089_v37  ;;  %970 = vset.pattern.permute.xlu0 %v1089_v37 }
  0xbb   :  { %v465_v53 = vpop.xlane.xlu1 %464  ;;  %v951_v60 = vpack.c.bf16 %v475_v56, %v474_v57 }
  0xbc   :  { %886 = vmatmul.mubr.msk.f32.vlgmr.msra.gmra.mrb[0].mxu0 %vm102_vm1, %v35_v22  ;;  %v462_v54 = vpop.xlane.xlu0 %461  ;;  %v477_v61 = vmul.f32 0.00390625, %v465_v53 }
  0xbd   :  { %923 = vmatprep.mubr.msk.f32.mxu0 %vm177_vm2, %v37_v23  ;;  %v476_v62 = vmul.f32 0.00390625, %v462_v54  ;;  %v1288_v23 = vld [vmem:[%s1432_s3 + $0x28] sm:$0xff] }
  0xbf   :  { %v471_v7 = vpop.xlane.xlu1 %470  ;;  %v954_v11 = vpack.c.bf16 %v477_v61, %v476_v62  ;;  %v1341_v62 = vld [vmem:[%s1433_s4 + $0x20] sm:$0xff] }
  0xc0   :  { %v468_v10 = vpop.xlane.xlu0 %467  ;;  %v479_v16 = vmul.f32 0.00390625, %v471_v7 }
  0xc1   :  { %v478_v17 = vmul.f32 0.00390625, %v468_v10 }
  0xc3   :  { %v957_v33 = vpack.c.bf16 %v479_v16, %v478_v17 }
 0x18f   :  { %v172_v43 = vpop.f32.mrb[0].mxu0 }
 0x190   :  { %v173_v50 = vadd.f32 %v172_v43, %v1250_v42  ;;  %v887_v51 = vpop.f32.mrb[1].mxu0  ;;  %v1312_v43 = vld [vmem:[%s1433_s4 + $0x8] sm:$0xff] }
 0x192   :  { %v176_v52 = vmax.f32 %v173_v50, 0.0  ;;  %v1324_v50 = vld [vmem:[%s1433_s4 + $0x18] sm:$0xff] }
 0x194   :  { %888 = vmatprep.subr.msk.mxu1 %vm202_vm3, %v176_v52 }
 0x195   :  { %889 = vmatpush3.msk.msra.mxu1 %vm202_vm3, %v176_v52  ;;  %v1329_v52 = vld [vmem:[%s1433_s4 + $0x10] sm:$0xff] }
 0x196   :  { %891 = vmatmul.mubr.msk.f32.vlgmr.msra.gmra.mrb[0].mxu1 %vm177_vm2, %v1256_v58  ;;  %947 = vmatprep.subr.bf16.mxu1 %v1086_v24 }
 0x197   :  { %949 = vmatpush3.bf16.msra.mxu1 %v948_v55  ;;  %893 = vmatprep.mubr.msk.f32.mxu1 %vm177_vm2, %v1262_v59 }
 0x198   :  { %950 = vmatprep.subr.bf16.mxu1 %v1086_v24 }
 0x19a   :  { %894 = vmatmul.mubr.msk.f32.gmra.mrb[2].mxu1 %vm177_vm2, %v1273_v63 }
 0x19b   :  { %952 = vmatpush3.bf16.msra.mxu1 %v951_v60  ;;  %896 = vmatprep.mubr.msk.f32.mxu1 %vm177_vm2, %v1279_v3  ;;  %v1336_v60 = vld [vmem:[%s1433_s4 + $0x28] sm:$0xff] }
 0x19c   :  { %953 = vmatprep.subr.bf16.mxu1 %v1086_v24 }
 0x19e   :  { %897 = vmatmul.mubr.msk.f32.gmra.mrb[4].mxu1 %vm177_vm2, %v1288_v23 }
 0x19f   :  { %955 = vmatpush3.bf16.msra.mxu1 %v954_v11  ;;  %899 = vmatprep.mubr.msk.f32.mxu1 %vm177_vm2, %v43_v29 }
 0x1a0   :  { %956 = vmatprep.subr.bf16.mxu1 %v1086_v24  ;;  %v1317_v24 = vld [vmem:[%s1433_s4] sm:$0xff] }
 0x1a2   :  { %900 = vmatmul.mubr.msk.f32.gmra.mrb[6].mxu1 %vm177_vm2, %v1300_v36 }
 0x1a3   :  { %958 = vmatpush3.bf16.msra.mxu1 %v957_v33  ;;  %918 = vmatprep.mubr.msk.f32.mxu1 %vm1087_vm0, %v1088_v25 }
 0x1a6   :  { %919 = vmatmul.mubr.msk.f32.vlgmr.msra.gmra.mrb[8].mxu1 %vm102_vm1, %v35_v22 }
 0x1a7   :  { %932 = vmatprep.mubr.msk.f32.mxu1 %vm177_vm2, %v43_v29  ;;  %v1348_v29 = vld [vmem:[%s1433_s4 + $0x38] sm:$0xff] }
 0x269   :  { %v892_v48 = vpop.f32.mrb[0].mxu1 }
 0x26a   :  { %v278_v25 = vadd.f32 %v892_v48, %v1312_v43  ;;  %v272_v49 = vpop.f32.mrb[1].mxu1 }
 0x26b   :  { %v273_v22 = vadd.f32 %v272_v49, %v1317_v24 }
 0x26c   :  { %v808_v51 = vmul.f32 -1.442695, %v278_v25 }
 0x26d   :  { %v807_v53 = vmul.f32 -1.442695, %v273_v22  ;;  %v895_v54 = vpop.f32.mrb[2].mxu1  ;;  %v1354_v22 = vld [vmem:[%s1433_s4 + $0x30] sm:$0xff]  ;;  %s1090_s4 = smov [#allocation5]  }
 0x26e   :  { %971 = vpow2.f32 %v808_v51  ;;  %v288_v55 = vadd.f32 %v895_v54, %v1324_v50  ;;  %v282_v56 = vpop.f32.mrb[3].mxu1  ;;  %s785_s13 = sshll.u32 %s1090_s4, 4  ;;  %s786_s13 = int_to_ptr.vmem [resolvable:$true] %s785_s13 }
 0x26f   :  { %973 = vpow2.f32 %v807_v53  ;;  %v283_v57 = vadd.f32 %v282_v56, %v1329_v52  ;;  %s1057_s14 = scalar_lea.vmem %s786_s13, 4096  ;;  %p1062_p9 = scmp.lt.s32.totalorder %s786_s13, %s786_s13 }
 0x270   :  { %v810_v61 = vmul.f32 -1.442695, %v288_v55  ;;  %p1058_p8 = scmp.ne.s32.totalorder %s786_s13, %s1057_s14  ;;  %p1063_p10 = scmp.lt.s32.totalorder %s1057_s14, %s1057_s14 }
 0x271   :  { %v809_v7 = vmul.f32 -1.442695, %v283_v57  ;;  %v898_v10 = vpop.f32.mrb[4].mxu1 }
 0x272   :  { %975 = vpow2.f32 %v810_v61  ;;  %v298_v11 = vadd.f32 %v898_v10, %v1336_v60  ;;  %v292_v16 = vpop.f32.mrb[5].mxu1  ;;  %p1064_p11 = por %p1063_p10, %p1062_p9 }
 0x273   :  { %977 = vpow2.f32 %v809_v7  ;;  %v293_v17 = vadd.f32 %v292_v16, %v1341_v62 }
 0x274   :  { %v812_v33 = vmul.f32 -1.442695, %v298_v11  ;;  %p1065_p12 = pnand %p1064_p11, %p1058_p8 }
 0x275   :  { %v811_v37 = vmul.f32 -1.442695, %v293_v17  ;;  %v901_v48 = vpop.f32.mrb[6].mxu1 }
 0x276   :  { %979 = vpow2.f32 %v812_v33  ;;  %v308_v25 = vadd.f32 %v901_v48, %v1348_v29  ;;  %v302_v49 = vpop.f32.mrb[7].mxu1 }
 0x277   :  { %981 = vpow2.f32 %v811_v37  ;;  %v303_v61 = vadd.f32 %v302_v49, %v1354_v22 }
 0x278   :  { %v972_v51 = vpop.eup %971  ;;  %v814_v57 = vmul.f32 -1.442695, %v308_v25 }
 0x279   :  { %v974_v53 = vpop.eup %973  ;;  %v336_v54 = vadd.f32 1.0, %v972_v51  ;;  %v546_v55 = vpop.f32.mrb[8].mxu1  ;;  %v813_v48 = vmul.f32 -1.442695, %v303_v61 }
 0x27a   :  { %v335_v56 = vadd.f32 1.0, %v974_v53  ;;  %v547_v7 = vadd.f32 %v546_v55, %v1250_v42  ;;  %v920_v10 = vpop.f32.mrb[9].mxu1 }
 0x27b   :  { %983 = vrcp.f32 %v336_v54 }
 0x27c   :  { %v976_v11 = vpop.eup %975  ;;  %985 = vrcp.f32 %v335_v56  ;;  %v550_v16 = vmax.f32 %v547_v7, 0.0 }
 0x27d   :  { %v978_v17 = vpop.eup %977  ;;  %v338_v33 = vadd.f32 1.0, %v976_v11  ;;  %987 = vpow2.f32 %v814_v57 }
 0x27e   :  { %921 = vmatprep.subr.msk.mxu0 %vm202_vm3, %v550_v16  ;;  %959 = vmatprep.subr.msk.mxu1 %vm202_vm3, %v550_v16  ;;  %v337_v37 = vadd.f32 1.0, %v978_v17 }
 0x27f   :  { %989 = vrcp.f32 %v338_v33  ;;  %922 = vmatpush3.msk.msra.mxu0 %vm202_vm3, %v550_v16  ;;  %960 = vmatpush3.msk.msra.mxu1 %vm202_vm3, %v550_v16 }
 0x280   :  { %v980_v42 = vpop.eup %979  ;;  %924 = vmatmul.mubr.msk.f32.vlgmr.msra.gmra.mrb[2].mxu0 %vm177_vm2, %v1256_v58  ;;  %933 = vmatmul.mubr.msk.f32.vlgmr.msra.gmra.mrb[10].mxu1 %vm177_vm2, %v1300_v36  ;;  %991 = vpow2.f32 %v813_v48 }
 0x281   :  { %926 = vmatprep.mubr.msk.f32.mxu0 %vm177_vm2, %v1262_v59  ;;  %v982_v25 = vpop.eup %981  ;;  %993 = vrcp.f32 %v337_v37  ;;  %v340_v49 = vadd.f32 1.0, %v980_v42 }
 0x282   :  { %v339_v58 = vadd.f32 1.0, %v982_v25 }
 0x283   :  { %995 = vrcp.f32 %v340_v49 }
 0x284   :  { %927 = vmatmul.mubr.msk.f32.gmra.mrb[4].mxu0 %vm177_vm2, %v1273_v63  ;;  %997 = vrcp.f32 %v339_v58 }
 0x285   :  { %v984_v51 = vpop.eup %983  ;;  %929 = vmatprep.mubr.msk.f32.mxu0 %vm177_vm2, %v1279_v3 }
 0x286   :  { %v986_v53 = vpop.eup %985  ;;  %366 = vperm.xlu1 %969, %v984_v51  }
 0x287   :  { %361 = vperm.xlu0 %970, %v986_v53   ;;  %v988_v36 = vpop.eup %987 }
 0x288   :  { %930 = vmatmul.mubr.msk.f32.gmra.mrb[6].mxu0 %vm177_vm2, %v1288_v23  ;;  %v342_v54 = vadd.f32 1.0, %v988_v36 }
 0x289   :  { %v990_v59 = vpop.eup %989 }
 0x28a   :  { %376 = vperm.xlu1 %969, %v990_v59   ;;  %v992_v55 = vpop.eup %991  ;;  %999 = vrcp.f32 %v342_v54 }
 0x28b   :  { %v994_v56 = vpop.eup %993  ;;  %v341_v63 = vadd.f32 1.0, %v992_v55 }
 0x28d   :  { %v996_v57 = vpop.eup %995  ;;  %1001 = vrcp.f32 %v341_v63 }
 0x28e   :  { %371 = vperm.xlu1 %969, %v994_v56   ;;  %v998_v3 = vpop.eup %997 }
 0x292   :  { %386 = vperm.xlu1 %969, %v996_v57  }
 0x294   :  { %v1000_v61 = vpop.eup %999 }
 0x296   :  { %381 = vperm.xlu1 %969, %v998_v3  }
 0x297   :  { %v1002_v7 = vpop.eup %1001 }
 0x29a   :  { %396 = vperm.xlu1 %969, %v1000_v61  }
 0x29e   :  { %391 = vperm.xlu1 %969, %v1002_v7  }
 0x305   :  { %v367_v10 = vpop.permute.xlu1 %366 }
 0x306   :  { %v401_v23 = vmul.f32 %v367_v10, %v1152_v8  ;;  %v402_v11 = vmul.f32 %v367_v10, %v1154_v9  ;;  %v362_v16 = vpop.permute.xlu0 %361 }
 0x307   :  { %v399_v17 = vmul.f32 %v362_v16, %v1140_v2  ;;  %v400_v33 = vmul.f32 %v362_v16, %v1144_v4 }
 0x308   :  { %417 = vst [vmem:[#allocation5 + $0x10] sm:$0xff] %v401_v23  ;;  %418 = vst [vmem:[#allocation5 + $0x18] sm:$0xff] %v402_v11 }
 0x309   :  { %415 = vst [vmem:[#allocation5] sm:$0xff] %v399_v17  ;;  %416 = vst [vmem:[#allocation5 + $0x8] sm:$0xff] %v400_v33  ;;  %v377_v48 = vpop.permute.xlu1 %376 }
 0x30a   :  { %v405_v37 = vmul.f32 %v377_v48, %v1146_v5  ;;  %v406_v42 = vmul.f32 %v377_v48, %v1148_v6 }
 0x30c   :  { %421 = vst [vmem:[#allocation5 + $0x30] sm:$0xff] %v405_v37  ;;  %422 = vst [vmem:[#allocation5 + $0x38] sm:$0xff] %v406_v42 }
 0x30d   :  { %v372_v25 = vpop.permute.xlu1 %371 }
 0x30e   :  { %v403_v8 = vmul.f32 %v372_v25, %v1136_v0  ;;  %v404_v9 = vmul.f32 %v372_v25, %v1138_v1 }
 0x310   :  { %419 = vst [vmem:[#allocation5 + $0x20] sm:$0xff] %v403_v8  ;;  %420 = vst [vmem:[#allocation5 + $0x28] sm:$0xff] %v404_v9 }
 0x311   :  { %v387_v2 = vpop.permute.xlu1 %386 }
 0x312   :  { %v409_v4 = vmul.f32 %v387_v2, %v1160_v12  ;;  %v410_v49 = vmul.f32 %v387_v2, %v1162_v13 }
 0x314   :  { %425 = vst [vmem:[#allocation5 + $0x50] sm:$0xff] %v409_v4  ;;  %426 = vst [vmem:[#allocation5 + $0x58] sm:$0xff] %v410_v49 }
 0x315   :  { %v382_v51 = vpop.permute.xlu1 %381 }
 0x316   :  { %v407_v5 = vmul.f32 %v382_v51, %v1164_v14  ;;  %v408_v6 = vmul.f32 %v382_v51, %v1166_v15 }
 0x318   :  { %423 = vst [vmem:[#allocation5 + $0x40] sm:$0xff] %v407_v5  ;;  %424 = vst [vmem:[#allocation5 + $0x48] sm:$0xff] %v408_v6 }
 0x319   :  { %v397_v53 = vpop.permute.xlu1 %396 }
 0x31a   :  { %v413_v0 = vmul.f32 %v397_v53, %v1172_v18  ;;  %v414_v1 = vmul.f32 %v397_v53, %v1174_v19 }
 0x31c   :  { %429 = vst [vmem:[#allocation5 + $0x70] sm:$0xff] %v413_v0  ;;  %430 = vst [vmem:[#allocation5 + $0x78] sm:$0xff] %v414_v1 }
 0x31d   :  { %v392_v58 = vpop.permute.xlu1 %391 }
 0x31e   :  { %v411_v12 = vmul.f32 %v392_v58, %v1176_v20  ;;  %v412_v13 = vmul.f32 %v392_v58, %v1178_v21 }
 0x320   :  { %427 = vst [vmem:[#allocation5 + $0x60] sm:$0xff] %v411_v12  ;;  %428 = vst [vmem:[#allocation5 + $0x68] sm:$0xff] %v412_v13 }
 0x353   :  { %v925_v36 = vpop.f32.mrb[2].mxu0  ;;  %v934_v14 = vpop.f32.mrb[10].mxu1 }
 0x354   :  { %v626_v15 = vadd.f32 %v925_v36, %v1312_v43  ;;  %v620_v59 = vpop.f32.mrb[3].mxu0  ;;  %v650_v54 = vpop.f32.mrb[11].mxu1  ;;  %v656_v19 = vadd.f32 %v934_v14, %v1348_v29 }
 0x355   :  { %v621_v55 = vadd.f32 %v620_v59, %v1317_v24  ;;  %v651_v57 = vadd.f32 %v650_v54, %v1354_v22 }
 0x356   :  { %v826_v18 = vmul.f32 -1.442695, %v626_v15  ;;  %v832_v43 = vmul.f32 -1.442695, %v656_v19 }
 0x357   :  { %v825_v56 = vmul.f32 -1.442695, %v621_v55  ;;  %v928_v63 = vpop.f32.mrb[4].mxu0  ;;  %v831_v23 = vmul.f32 -1.442695, %v651_v57 }
 0x358   :  { %1003 = vpow2.f32 %v826_v18  ;;  %v636_v20 = vadd.f32 %v928_v63, %v1324_v50  ;;  %v630_v21 = vpop.f32.mrb[5].mxu0 }
 0x359   :  { %1005 = vpow2.f32 %v825_v56  ;;  %v631_v3 = vadd.f32 %v630_v21, %v1329_v52 }
 0x35a   :  { %v828_v61 = vmul.f32 -1.442695, %v636_v20 }
 0x35b   :  { %v827_v7 = vmul.f32 -1.442695, %v631_v3  ;;  %v931_v10 = vpop.f32.mrb[6].mxu0 }
 0x35c   :  { %1007 = vpow2.f32 %v828_v61  ;;  %v646_v24 = vadd.f32 %v931_v10, %v1336_v60  ;;  %v640_v29 = vpop.f32.mrb[7].mxu0 }
 0x35d   :  { %1009 = vpow2.f32 %v827_v7  ;;  %v641_v11 = vadd.f32 %v640_v29, %v1341_v62 }
 0x35e   :  { %v830_v22 = vmul.f32 -1.442695, %v646_v24  ;;  %1011 = vpow2.f32 %v832_v43 }
 0x35f   :  { %v829_v16 = vmul.f32 -1.442695, %v641_v11  ;;  %1013 = vpow2.f32 %v831_v23 }
 0x360   :  { %1015 = vpow2.f32 %v830_v22 }
 0x361   :  { %1017 = vpow2.f32 %v829_v16 }
 0x362   :  { %v1004_v50 = vpop.eup %1003 }
 0x363   :  { %v1006_v52 = vpop.eup %1005  ;;  %v684_v17 = vadd.f32 1.0, %v1004_v50 }
 0x364   :  { %v683_v33 = vadd.f32 1.0, %v1006_v52 }
 0x365   :  { %1019 = vrcp.f32 %v684_v17 }
 0x366   :  { %v1008_v48 = vpop.eup %1007  ;;  %1021 = vrcp.f32 %v683_v33 }
 0x367   :  { %v1010_v37 = vpop.eup %1009  ;;  %v686_v42 = vadd.f32 1.0, %v1008_v48 }
 0x368   :  { %v1012_v60 = vpop.eup %1011  ;;  %v685_v25 = vadd.f32 1.0, %v1010_v37 }
 0x369   :  { %v1014_v8 = vpop.eup %1013  ;;  %1023 = vrcp.f32 %v686_v42  ;;  %v690_v4 = vadd.f32 1.0, %v1012_v60 }
 0x36a   :  { %v1016_v62 = vpop.eup %1015  ;;  %1025 = vrcp.f32 %v685_v25  ;;  %v689_v51 = vadd.f32 1.0, %v1014_v8 }
 0x36b   :  { %v1018_v9 = vpop.eup %1017  ;;  %v688_v2 = vadd.f32 1.0, %v1016_v62 }
 0x36c   :  { %v687_v49 = vadd.f32 1.0, %v1018_v9 }
 0x36d   :  { %1027 = vrcp.f32 %v688_v2 }
 0x36e   :  { %1029 = vrcp.f32 %v687_v49 }
 0x36f   :  { %v1020_v5 = vpop.eup %1019  ;;  %1031 = vrcp.f32 %v690_v4 }
 0x370   :  { %v1022_v6 = vpop.eup %1021  ;;  %1033 = vrcp.f32 %v689_v51  ;;  %714 = vperm.xlu0 %970, %v1020_v5  }
 0x371   :  { %709 = vperm.xlu1 %969, %v1022_v6  }
 0x373   :  { %v1024_v53 = vpop.eup %1023 }
 0x374   :  { %v1026_v0 = vpop.eup %1025  ;;  %724 = vperm.xlu0 %970, %v1024_v53  }
 0x375   :  { %719 = vperm.xlu1 %969, %v1026_v0  }
 0x377   :  { %v1028_v1 = vpop.eup %1027 }
 0x378   :  { %v1030_v58 = vpop.eup %1029  ;;  %734 = vperm.xlu0 %970, %v1028_v1  }
 0x379   :  { %v1032_v12 = vpop.eup %1031  ;;  %729 = vperm.xlu1 %969, %v1030_v58  }
 0x37a   :  { %v1034_v13 = vpop.eup %1033 }
 0x37c   :  { %744 = vperm.xlu0 %970, %v1032_v12  }
 0x37d   :  { %739 = vperm.xlu1 %969, %v1034_v13  }
 0x3ef   :  { %v715_v36 = vpop.permute.xlu0 %714 }
 0x3f0   :  { %v749_v14 = vmul.f32 %v715_v36, %v1187_v26  ;;  %v750_v15 = vmul.f32 %v715_v36, %v1189_v27  ;;  %v710_v59 = vpop.permute.xlu1 %709 }
 0x3f1   :  { %v747_v54 = vmul.f32 %v710_v59, %v1191_v28  ;;  %v748_v55 = vmul.f32 %v710_v59, %v1195_v30 }
 0x3f2   :  { %766 = vst [vmem:[#allocation5 + $0x90] sm:$0xff] %v749_v14  ;;  %767 = vst [vmem:[#allocation5 + $0x98] sm:$0xff] %v750_v15 }
 0x3f3   :  { %764 = vst [vmem:[#allocation5 + $0x80] sm:$0xff] %v747_v54  ;;  %765 = vst [vmem:[#allocation5 + $0x88] sm:$0xff] %v748_v55  ;;  %v725_v18 = vpop.permute.xlu0 %724 }
 0x3f4   :  { %v753_v19 = vmul.f32 %v725_v18, %v1197_v31  ;;  %v754_v56 = vmul.f32 %v725_v18, %v1199_v32  ;;  %v720_v63 = vpop.permute.xlu1 %719 }
 0x3f5   :  { %v751_v57 = vmul.f32 %v720_v63, %v1203_v34  ;;  %v752_v26 = vmul.f32 %v720_v63, %v1205_v35 }
 0x3f6   :  { %770 = vst [vmem:[#allocation5 + $0xb0] sm:$0xff] %v753_v19  ;;  %771 = vst [vmem:[#allocation5 + $0xb8] sm:$0xff] %v754_v56 }
 0x3f7   :  { %768 = vst [vmem:[#allocation5 + $0xa0] sm:$0xff] %v751_v57  ;;  %769 = vst [vmem:[#allocation5 + $0xa8] sm:$0xff] %v752_v26  ;;  %v735_v27 = vpop.permute.xlu0 %734 }
 0x3f8   :  { %v757_v28 = vmul.f32 %v735_v27, %v1211_v38  ;;  %v758_v30 = vmul.f32 %v735_v27, %v1213_v39  ;;  %v730_v20 = vpop.permute.xlu1 %729 }
 0x3f9   :  { %v755_v21 = vmul.f32 %v730_v20, %v1215_v40  ;;  %v756_v31 = vmul.f32 %v730_v20, %v1217_v41 }
 0x3fa   :  { %774 = vst [vmem:[#allocation5 + $0xd0] sm:$0xff] %v757_v28  ;;  %775 = vst [vmem:[#allocation5 + $0xd8] sm:$0xff] %v758_v30 }
 0x3fb   :  { %772 = vst [vmem:[#allocation5 + $0xc0] sm:$0xff] %v755_v21  ;;  %773 = vst [vmem:[#allocation5 + $0xc8] sm:$0xff] %v756_v31  ;;  %v745_v32 = vpop.permute.xlu0 %744 }
 0x3fc   :  { %v761_v34 = vmul.f32 %v745_v32, %v1223_v44  ;;  %v762_v35 = vmul.f32 %v745_v32, %v1225_v45  ;;  %v740_v3 = vpop.permute.xlu1 %739 }
 0x3fd   :  { %v759_v38 = vmul.f32 %v740_v3, %v1227_v46  ;;  %v760_v39 = vmul.f32 %v740_v3, %v1229_v47 }
 0x3fe   :  { %778 = vst [vmem:[#allocation5 + $0xf0] sm:$0xff] %v761_v34  ;;  %779 = vst [vmem:[#allocation5 + $0xf8] sm:$0xff] %v762_v35 }
 0x3ff   :  { %776 = vst [vmem:[#allocation5 + $0xe0] sm:$0xff] %v759_v38  ;;  %777 = vst [vmem:[#allocation5 + $0xe8] sm:$0xff] %v760_v39 }
 0x400   :  { %1068 = shalt.err (!%p1065_p12)
}
 0x401   :  { %s1069_s17 = scalar_lea.hbm %s1434_s5, 4096 }
 0x402   :  { %p1070_p13 = scmp.ne.s32.totalorder %s1434_s5, %s1069_s17  ;;  %p1073_p0 = scmp.lt.u32.totalorder %s1069_s17, %s1434_s5 }
 0x404   :  { %p1075_p1 = pnand %p1073_p0, %p1070_p13 }
 0x406   :  { %1078 = shalt.err (!%p1075_p1)
}
 0x407   :  { %791 = dma.vmem_to_hbm [thread:$0]  %s786_s13, 4096, %s1434_s5, [#allocation4], %s1084_s28, %s1084_s28, %s1085_s29  }
 0x408   :  { %1081 = dma.done.wait [#allocation4], 4096  }
 0x409   :  { %1082 = vsyncadd [#allocation4], 4294963200 }
 0x40a   :  { %795 = vsyncpa [#allocation3], 1 }
 0x40b   :  { %796 = vsyncpa [#allocation4], 1 }

</bundles_post_ra>
